<compile_context>
chip_gen: v7x
topology: tpu7x:2x2x1
jax: 0.10.0
libtpu: 0.0.40
codegen_flags: <defaults>
</compile_context>

<pallas_src>
import jax
import jax.numpy as jnp
from jax import lax
from jax.experimental import pallas as pl
from jax.experimental.pallas import tpu as pltpu

B = 2              # sequences in the batch ("lists" in DatasetOutput)
T = 128            # frames per sequence
N = B * T          # concatenated frame count (lane axis)
TILE_N = 4096      # frames per grid step (production default; clamped for small N)
NUM_CORES = 2      # outer "parallel" grid axis -> both v7x TensorCores; harmless on 1-TC chips
N_ACCENT = 4
N_PHONEME = 8
SPK_EMB = 4
D_RAW = 1 + 1 + 1 + N_ACCENT + N_PHONEME + SPK_EMB + 1 + 1 + 1   # 22
D_FEAT = 24        # padded feature dim (multiple of 8); row D_RAW carries the constant-1 bias
C_PAD = 4          # rows 0,1,2 = lf0, vuv, vol; row 3 of diff carries the voiced mask


def model_loss_kernel(feat_ref, w_ref, diff_ref, out_ref):
    """One grid step over TILE_N frames: stand-in predictor matmul + fused loss reduce.

    out_ref (VMEM, view (1, C_PAD, 1)): this core's running partial sums
      row 0: sum(sq_lf0 * voiced), row 1: sum(sq_vuv), row 2: sum(sq_vol), row 3: sum(voiced)
    """
    i = pl.program_id(1)

    @pl.when(i == 0)
    def _():
        out_ref[...] = jnp.zeros_like(out_ref)

    # Stand-in predictor: bf16 MXU matmul, f32 accumulation. Bias is folded into w_ref
    # (feat row D_RAW is the constant 1.0), so no broadcast-add is needed.
    preds = jnp.dot(w_ref[...], feat_ref[...],
                    preferred_element_type=jnp.float32)            # [C_PAD, TILE_N] f32

    diff = diff_ref[...].astype(jnp.float32)                       # [C_PAD, TILE_N] f32
    err = preds - diff
    sq = err * err         # row 3: (0 - voiced)^2 == voiced, since w row 3 == 0 and voiced in {0,1}

    # Mask only the lf0 row with the voiced mask (carried in diff row 3).
    voiced = jnp.broadcast_to(diff[C_PAD - 1:C_PAD, :], sq.shape)
    row = lax.broadcasted_iota(jnp.int32, sq.shape, 0)
    red = sq * jnp.where(row == 0, voiced, 1.0)

    # ONE fused cross-lane reduction per tile, accumulated into the resident output block.
    out_ref[...] += jnp.sum(red, axis=-1, keepdims=True)[None]


def run_model(feat_t, w_aug, diff, *, tile_n=TILE_N, num_cores=NUM_CORES):
    d_feat, n = feat_t.shape
    c_pad = w_aug.shape[0]
    assert diff.shape == (c_pad, n)
    assert n % (num_cores * 128) == 0, "lane axis must be a 128-multiple per core"
    tile_n = max(128, (min(tile_n, n // num_cores) // 128) * 128)
    assert n % (num_cores * tile_n) == 0, "lane axis must be a multiple of num_cores*tile_n"
    n_tiles = n // (num_cores * tile_n)   # tiles per core

    bytes_accessed = n * (d_feat + c_pad) * 2 + c_pad * d_feat * 2 + num_cores * c_pad * 4
    flops = 2 * c_pad * d_feat * n + 6 * c_pad * n

    partials = pl.pallas_call(
        model_loss_kernel,
        out_shape=jax.ShapeDtypeStruct((num_cores, c_pad, 1), jnp.float32),
        grid_spec=pltpu.PrefetchScalarGridSpec(
            num_scalar_prefetch=0,
            grid=(num_cores, n_tiles),
            in_specs=[
                pl.BlockSpec((d_feat, tile_n), lambda c, i: (0, c * n_tiles + i)),  # feat slab
                pl.BlockSpec((c_pad, d_feat), lambda c, i: (0, 0)),                 # weights
                pl.BlockSpec((c_pad, tile_n), lambda c, i: (0, c * n_tiles + i)),   # diff slab
            ],
            # Per-core partial-sum block; constant over the inner axis => VMEM-resident
            # accumulator (init at i==0 via pl.when), written back once per core.
            out_specs=pl.BlockSpec((1, c_pad, 1), lambda c, i: (c, 0, 0)),
        ),
        compiler_params=pltpu.CompilerParams(
            dimension_semantics=("parallel", "arbitrary"),
        ),
        cost_estimate=pl.CostEstimate(flops=flops, transcendentals=0,
                                      bytes_accessed=bytes_accessed),
    )(feat_t, w_aug, diff)

    # Final reductions / divisions in plain JAX (trivial work, keeps the kernel simple and
    # makes the two-core partial combine + num_voiced == 0 guard cheap and explicit).
    sums = jnp.sum(partials[:, :, 0], axis=0)                      # [C_PAD]
    num_voiced = sums[3]
    loss_lf0 = jnp.where(num_voiced > 0, sums[0] / jnp.maximum(num_voiced, 1.0), 0.0)
    loss_vuv = sums[1] / n
    loss_vol = sums[2] / n
    loss = loss_lf0 + loss_vuv + loss_vol
    return jnp.stack([loss, loss_lf0, loss_vuv, loss_vol])


def build_inputs(key):
    """Build DatasetOutput-like lists and glue them into kernel-layout arrays."""
    keys = jax.random.split(key, 20)

    # Per-sequence raw data (lists of length B, each [T, 1] like the torch dataset).
    input_lf0 = [jax.random.normal(keys[0 + i], (T, 1), jnp.float32) for i in range(B)]
    input_vuv = [jax.random.normal(keys[2 + i], (T, 1), jnp.float32) for i in range(B)]
    input_vol = [jax.random.normal(keys[4 + i], (T, 1), jnp.float32) for i in range(B)]
    accent = [jax.random.normal(keys[6 + i], (T, N_ACCENT), jnp.float32) for i in range(B)]
    phoneme = [jax.random.randint(keys[8 + i], (T,), 0, N_PHONEME) for i in range(B)]
    speaker_id = [jnp.asarray(i % 2, jnp.int32) for i in range(B)]
    lf0_t = [jax.random.uniform(keys[10 + i], ()) for i in range(B)]
    vuv_t = [jax.random.uniform(keys[12 + i], ()) for i in range(B)]
    vol_t = [jax.random.uniform(keys[14 + i], ()) for i in range(B)]

    voiced_l = [jax.random.bernoulli(keys[16 + i], 0.7, (T, 1)) for i in range(B)]
    voiced_l[0] = voiced_l[0].at[0, 0].set(True)   # guarantee at least one voiced frame

    tkey = jax.random.split(keys[17], 2 * B)
    target_lf0 = [jax.random.normal(tkey[2 * i], (T, 1)) for i in range(B)]
    noise_lf0 = [jax.random.normal(tkey[2 * i + 1], (T, 1)) for i in range(B)]
    tkey2 = jax.random.split(keys[18], 8)
    target_vuv = [jax.random.normal(tkey2[0 + i], (T, 1)) for i in range(B)]
    noise_vuv = [jax.random.normal(tkey2[2 + i], (T, 1)) for i in range(B)]
    target_vol = [jax.random.normal(tkey2[4 + i], (T, 1)) for i in range(B)]
    noise_vol = [jax.random.normal(tkey2[6 + i], (T, 1)) for i in range(B)]

    # Deterministic stand-in predictor parameters.
    pkey = jax.random.split(keys[19], 3)
    spk_table = 0.1 * jax.random.normal(pkey[0], (2, SPK_EMB), jnp.float32)
    w = 0.1 * jax.random.normal(pkey[1], (C_PAD, D_FEAT), jnp.float32)
    b = 0.1 * jax.random.normal(pkey[2], (C_PAD, 1), jnp.float32)
    # Only rows 0..2 (lf0/vuv/vol) are meaningful; row 3 MUST be zero so sq row 3 carries
    # the voiced count inside the kernel.
    w = w.at[3:].set(0.0)
    b = b.at[3:].set(0.0)
    # Fold the bias into the weight matrix (feat row D_RAW is the constant 1.0).
    w_aug = w.at[:, D_RAW].set(b[:, 0])

    # Per-frame feature matrix built CHANNEL-MAJOR directly (no [N, D] -> transpose round trip).
    # TODO(synk): in production, have the upstream feature producer emit channel-major too.
    feats_t = []
    for i in range(B):
        ph_oh = jax.nn.one_hot(phoneme[i], N_PHONEME, dtype=jnp.float32)       # [T, N_PHONEME]
        spk = jnp.broadcast_to(spk_table[speaker_id[i]], (T, SPK_EMB))         # [T, SPK_EMB]
        f_t = jnp.concatenate(
            [input_lf0[i].T, input_vuv[i].T, input_vol[i].T, accent[i].T, ph_oh.T, spk.T,
             jnp.full((1, T), lf0_t[i]), jnp.full((1, T), vuv_t[i]),
             jnp.full((1, T), vol_t[i])], axis=0)                              # [D_RAW, T]
        feats_t.append(f_t)
    feat_t = jnp.concatenate(feats_t, axis=1)                                  # [D_RAW, N]
    feat_t = jnp.pad(feat_t, ((0, D_FEAT - D_RAW), (0, 0)))                    # [D_FEAT, N]
    feat_t = feat_t.at[D_RAW, :].set(1.0)                                      # bias row

    def cat_sq(lst):  # torch.cat(...).squeeze(1)
        return jnp.concatenate(lst, axis=0)[:, 0].astype(jnp.float32)

    voiced_vec = jnp.concatenate(voiced_l, axis=0)[:, 0].astype(jnp.float32)   # [N], 0/1

    # diff rows 0..2 = target - noise; row 3 = voiced mask (one streamed operand, no padding).
    diff = jnp.zeros((C_PAD, N), jnp.float32)
    diff = (diff.at[0].set(cat_sq(target_lf0) - cat_sq(noise_lf0))
                .at[1].set(cat_sq(target_vuv) - cat_sq(noise_vuv))
                .at[2].set(cat_sq(target_vol) - cat_sq(noise_vol))
                .at[3].set(voiced_vec))

    # bf16 streaming for the dominant operands (kernel accumulates in f32).
    feat_t = feat_t.astype(jnp.bfloat16)
    w_aug = w_aug.astype(jnp.bfloat16)
    diff = diff.astype(jnp.bfloat16)

    data_num = 16  # len(data) for the DatasetOutput dict (number of keys)
    return feat_t, w_aug, diff, data_num


def reference(feat_t, w_aug, diff):
    f = feat_t.astype(jnp.float32)
    w = w_aug.astype(jnp.float32)
    d = diff.astype(jnp.float32)
    preds = jnp.dot(w, f, precision=jax.lax.Precision.HIGHEST)
    sq = (preds - d) ** 2
    v = d[3]
    loss_lf0 = jnp.sum(sq[0] * v) / jnp.sum(v)
    loss_vuv = jnp.mean(sq[1])
    loss_vol = jnp.mean(sq[2])
    return jnp.stack([loss_lf0 + loss_vuv + loss_vol, loss_lf0, loss_vuv, loss_vol])


if __name__ == "__main__":
    key = jax.random.PRNGKey(0)
    feat_t, w_aug, diff, data_num = build_inputs(key)

    losses = jax.block_until_ready(run_model(feat_t, w_aug, diff))

    ref = reference(feat_t, w_aug, diff)
    assert jnp.allclose(losses, ref, rtol=1e-4, atol=1e-5), (losses, ref)

    model_output = {
        "loss": losses[0],
        "loss_f0": losses[1],
        "loss_vuv": losses[2],
        "loss_vol": losses[3],
        "data_num": data_num,
    }
    del model_output  # shapes/dtypes verified above

    print("KERNEL_OK")
</pallas_src>

<mosaic_0001>
module attributes {stable_mosaic.version = 11 : i64} {
  func.func @model_loss_kernel(%arg0: i32, %arg1: i32, %arg2: memref<24x128xbf16, #tpu.memory_space<vmem>>, %arg3: memref<4x24xbf16, #tpu.memory_space<vmem>>, %arg4: memref<4x128xbf16, #tpu.memory_space<vmem>>, %arg5: memref<1x4x1xf32, #tpu.memory_space<vmem>>) attributes {dimension_semantics = [#tpu.dimension_semantics<parallel>, #tpu.dimension_semantics<arbitrary>], iteration_bounds = array<i64: 2, 1>, scalar_prefetch = 0 : i64, scratch_operands = 0 : i64, tpu.core_type = #tpu.core_type<tc>, window_params = [{transform_indices = @transform_0, window_bounds = array<i64: 24, 128>}, {pipeline_mode = #tpu.pipeline_mode<synchronous>, transform_indices = @transform_1, window_bounds = array<i64: 4, 24>}, {transform_indices = @transform_2, window_bounds = array<i64: 4, 128>}, {transform_indices = @transform_3, window_bounds = array<i64: 1, 4, 1>}]} {
    %c0_i32 = arith.constant 0 : i32
    %0 = arith.cmpi eq, %arg1, %c0_i32 : i32
    %1 = arith.extui %0 : i1 to i32
    %c0_i32_0 = arith.constant 0 : i32
    %2 = arith.cmpi ne, %1, %c0_i32_0 : i32
    scf.if %2 {
      %cst_15 = arith.constant 0.000000e+00 : f32
      %25 = vector.broadcast %cst_15 : f32 to vector<1x4x1xf32>
      %c0_16 = arith.constant 0 : index
      %c0_17 = arith.constant 0 : index
      %c0_18 = arith.constant 0 : index
      %26 = vector.load %arg5[%c0_16, %c0_17, %c0_18] : memref<1x4x1xf32, #tpu.memory_space<vmem>>, vector<1x4x1xf32>
      tpu.vector_store %arg5[%c0_16, %c0_17, %c0_18], %25 {strides = array<i32>} : memref<1x4x1xf32, #tpu.memory_space<vmem>>, vector<1x4x1xf32>,
    } else {
    }
    %c0 = arith.constant 0 : index
    %c0_1 = arith.constant 0 : index
    %3 = vector.load %arg3[%c0, %c0_1] : memref<4x24xbf16, #tpu.memory_space<vmem>>, vector<4x24xbf16>
    %c0_2 = arith.constant 0 : index
    %c0_3 = arith.constant 0 : index
    %4 = vector.load %arg2[%c0_2, %c0_3] : memref<24x128xbf16, #tpu.memory_space<vmem>>, vector<24x128xbf16>
    %cst = arith.constant dense<0.000000e+00> : vector<4x128xf32>
    %5 = tpu.matmul %3, %4, %cst {dimension_numbers = #tpu.dot_dimension_numbers<[1], [0], [0], [1], [0, 0, 1, 1], [], []>} : vector<4x24xbf16>, vector<24x128xbf16>, vector<4x128xf32> -> vector<4x128xf32>
    %c0_4 = arith.constant 0 : index
    %c0_5 = arith.constant 0 : index
    %6 = vector.load %arg4[%c0_4, %c0_5] : memref<4x128xbf16, #tpu.memory_space<vmem>>, vector<4x128xbf16>
    %7 = arith.extf %6 : vector<4x128xbf16> to vector<4x128xf32>
    %8 = arith.subf %5, %7 : vector<4x128xf32>
    %9 = arith.mulf %8, %8 : vector<4x128xf32>
    %10 = vector.extract_strided_slice %7 {offsets = [3, 0], sizes = [1, 128], strides = [1, 1]} : vector<4x128xf32> to vector<1x128xf32>
    %11 = vector.shape_cast %10 : vector<1x128xf32> to vector<1x128xf32>
    %12 = vector.broadcast %11 : vector<1x128xf32> to vector<4x128xf32>
    %13 = tpu.iota {dimensions = array<i32: 0>} : vector<4x128xi32>
    %c0_i32_6 = arith.constant 0 : i32
    %14 = vector.broadcast %c0_i32_6 : i32 to vector<4x128xi32>
    %15 = arith.cmpi eq, %13, %14 : vector<4x128xi32>
    %cst_7 = arith.constant 1.000000e+00 : f32
    %16 = vector.broadcast %cst_7 : f32 to vector<4x128xf32>
    %17 = arith.select %15, %12, %16 : vector<4x128xi1>, vector<4x128xf32>
    %18 = arith.mulf %9, %17 : vector<4x128xf32>
    %c0_8 = arith.constant 0 : index
    %c0_9 = arith.constant 0 : index
    %c0_10 = arith.constant 0 : index
    %19 = vector.load %arg5[%c0_8, %c0_9, %c0_10] : memref<1x4x1xf32, #tpu.memory_space<vmem>>, vector<1x4x1xf32>
    %cst_11 = arith.constant dense<0.000000e+00> : vector<4xf32>
    %20 = vector.multi_reduction <add>, %18, %cst_11 [1] : vector<4x128xf32> to vector<4xf32>
    %21 = vector.shape_cast %20 : vector<4xf32> to vector<4x1xf32>
    %22 = vector.shape_cast %21 : vector<4x1xf32> to vector<1x4x1xf32>
    %23 = arith.addf %19, %22 : vector<1x4x1xf32>
    %c0_12 = arith.constant 0 : index
    %c0_13 = arith.constant 0 : index
    %c0_14 = arith.constant 0 : index
    %24 = vector.load %arg5[%c0_12, %c0_13, %c0_14] : memref<1x4x1xf32, #tpu.memory_space<vmem>>, vector<1x4x1xf32>
    tpu.vector_store %arg5[%c0_12, %c0_13, %c0_14], %23 {strides = array<i32>} : memref<1x4x1xf32, #tpu.memory_space<vmem>>, vector<1x4x1xf32>,
    return
  }
  func.func @transform_0(%arg0: i32, %arg1: i32) -> (i32, i32) {
    %c1_i32 = arith.constant 1 : i32
    %0 = arith.muli %arg0, %c1_i32 : i32
    %1 = arith.addi %0, %arg1 : i32
    %c0_i32 = arith.constant 0 : i32
    %c0_i32_0 = arith.constant 0 : i32
    return %c0_i32, %1 : i32, i32
  }
  func.func @transform_1(%arg0: i32, %arg1: i32) -> (i32, i32) {
    %c0_i32 = arith.constant 0 : i32
    %c0_i32_0 = arith.constant 0 : i32
    %c0_i32_1 = arith.constant 0 : i32
    return %c0_i32, %c0_i32_0 : i32, i32
  }
  func.func @transform_2(%arg0: i32, %arg1: i32) -> (i32, i32) {
    %c1_i32 = arith.constant 1 : i32
    %0 = arith.muli %arg0, %c1_i32 : i32
    %1 = arith.addi %0, %arg1 : i32
    %c0_i32 = arith.constant 0 : i32
    %c0_i32_0 = arith.constant 0 : i32
    return %c0_i32, %1 : i32, i32
  }
  func.func @transform_3(%arg0: i32, %arg1: i32) -> (i32, i32, i32) {
    %c0_i32 = arith.constant 0 : i32
    %c0_i32_0 = arith.constant 0 : i32
    %c0_i32_1 = arith.constant 0 : i32
    return %arg0, %c0_i32, %c0_i32_0 : i32, i32, i32
  }
}

</mosaic_0001>

<bundles_post_ra>
// kernel: tpu_custom_call.1
= control target key start
LH: loop header
LB: loop body
LE: loop exit
PB: predicated region body
PF: predicated region fallthrough
CT: control target
= control target key end

     0   :  { %8 = vsyncpa [#allocation3], 0  ;;  %s728_s0 = inlined_call_operand.hbm [shape: bf16[24,256], index: 0, kind: input, shape index: {}]   ;;  %s729_s1 = inlined_call_operand.vmem [shape: bf16[4,24], index: 1, kind: input, shape index: {}]   ;;  %s730_s2 = inlined_call_operand.vmem [shape: bf16[4,256], index: 2, kind: input, shape index: {}]   ;;  %s731_s3 = inlined_call_operand.vmem [shape: f32[2,4,1], index: 3, kind: output, shape index: {}]  }
   0x1   :  { %10 = vsyncpa [#allocation3 + $0x1], 0  ;;  %s598_s12 = smov 0   ;;  %s600_s13 = smov 0  }
   0x2   :  { %s602_s14 = smov 0   ;;  %s604_s15 = smov 0  }
   0x3   :  { %s606_s16 = smov 0   ;;  %s608_s17 = smov 0  }
   0x4 LB: > { %s402_s18 = sadd.s32 4294967295, %s570_s17   ;;  %s28_s19 = sadd.s32 1, %s566_s16  ;;  %s570_s17 = sphi %s608_s17, %s16_s17   ;;  %s566_s16 = sphi %s606_s16, %s739_s16   ;;  %s562_s15 = sphi %s604_s15, %s738_s15   ;;  %s558_s14 = sphi %s602_s14, %s737_s14   ;;  %s554_s13 = sphi %s600_s13, %s736_s13   ;;  %s550_s12 = sphi %s598_s12, %s735_s12  }
   0x5   : > { %p30_p0 = scmp.ge.s32.totalorder %s28_s19, 2  ;;  %s37_s20 = sadd.s32 1, %s558_s14 }
   0x6   : > { %p44_p1 = scmp.ne.s32.totalorder %s558_s14, %s554_s13  ;;  %p45_p2 = scmp.eq.s32.totalorder %s570_s17, 0 }
   0x7   : > { %s741_s19 = smov (%p30_p0, %s28_s19), 0  ;;  %p50_p4 = scmp.ne.s32.totalorder %s554_s13, %s550_s12 }
   0x8   : > { %p46_p3 = por %p45_p2, %p44_p1  ;;  %s34_s21 = ssub.s32 %s566_s16, %s741_s19 }
   0x9   : > { %p51_p5 = scmp.eq.s32.totalorder %s402_s18, 0  ;;  %p35_p6 = scmp.eq.s32.totalorder %s34_s21, 0 }
   0xa   : > { %p434_p8 = scmp.lt.s32.totalorder %s570_s17, 2  ;;  %s152_s24 = sand.u32 1, %s558_s14  }
   0xb   : > { %p637_p7 = por %p51_p5, %p50_p4  ;;  %s406_s25 = sshll.u32 %s566_s16, 6 }
   0xc   : > { %s643_s23 = scalar_select %p35_p6, %s558_s14, %s37_s20  }
   0xd   : > { %s426_s26 = smul.u32 12, %s152_s24  ;;  %s650_s29 = scalar_lea.hbm %s728_s0, %s406_s25 }
   0xe   : > { %p652_p9 = pnand %p434_p8, %p46_p3  ;;  %s659_s6 = scalar_lea.sflag [#allocation3], %s152_s24 }
   0xf   : > { %s156_s4 = scalar_lea.vmem [#allocation2], %s426_s26  ;;  %s490_s7 = scalar_lea.hbm %s650_s29, 192 }
  0x10   : > { %s163_s5 = sshll.u32 %s156_s4, 4  ;;  %p491_p11 = scmp.ne.s32.totalorder %s650_s29, %s490_s7  ;;  %s656_s5 = int_to_ptr.vmem [resolvable:$true] %s163_s5 }
  0x11   : > { %p492_p12 = pneg %p652_p9  ;;  %s495_s10 = scalar_lea.hbm %s728_s0, 384 }
  0x12   : > { %p496_p1 = scmp.lt.u32.totalorder %s650_s29, %s728_s0  ;;  %p497_p2 = scmp.lt.u32.totalorder %s495_s10, %s490_s7 }
  0x13   : > { %p493_p13 = pnand %p492_p12, %p491_p11  ;;  %p499_p4 = scmp.lt.u32.totalorder %s490_s7, %s650_s29 }
  0x14   : > { %p498_p3 = por %p497_p2, %p496_p1 }
  0x15   : > { %p494_p0 = pneg %p493_p13 }
  0x16   : > { %p500_p5 = por %p499_p4, %p498_p3 }
  0x18   : > { %p501_p6 = pnand %p500_p5, %p494_p0 }
  0x1a   : > { %504 = shalt.err (!%p501_p6)
}
  0x1b   : > { %s505_s18 = scalar_lea.vmem %s656_s5, 192  ;;  %s572_s20 = smov [#allocation2]  }
  0x1c   : > { %p506_p8 = scmp.ne.s32.totalorder %s656_s5, %s505_s18  ;;  %s510_s21 = sshll.u32 %s572_s20, 4  ;;  %s511_s21 = int_to_ptr.vmem [resolvable:$false] %s510_s21 }
  0x1d   : > { %s512_s24 = scalar_lea.vmem %s511_s21, 384  ;;  %p513_p10 = scmp.lt.s32.totalorder %s656_s5, %s511_s21 }
  0x1e   : > { %p508_p11 = pnand %p506_p8, %p492_p12  ;;  %p514_p1 = scmp.lt.s32.totalorder %s512_s24, %s505_s18 }
  0x20   : > { %p509_p13 = pneg %p508_p11  ;;  %p515_p2 = por %p514_p1, %p513_p10 }
  0x22   : > { %p516_p3 = pnand %p515_p2, %p509_p13 }
  0x24   : > { %519 = shalt.err (!%p516_p3)
}
  0x25   : > { %s573_s25 = smov 128   ;;  %s574_s26 = smov 64  }
  0x26   : > { %s575_s27 = smov 4   ;;  %p180_p12 = scmp.lt.s32.totalorder %s570_s17, 3 }
  0x27   : > { %433 = dma.hbm_to_vmem [thread:$0]  (!%p652_p9), %s650_s29, 192, %s656_s5, %s659_s6, %s573_s25, %s574_s26, %s575_s27  }
  0x28   : > { %p734_p0 = scmp.ge.s32.totalorder %s570_s17, 1 }
  0x2a   : > { %p181_p4 = pnand %p734_p0, %p180_p12 }
  0x2b   : > { %s186_s28 = sand.u32 (!%p181_p4), 1, %s554_s13  }
  0x2c   : > { %184 = sbr.rel (%p181_p4) target bundleno = 425 (0x1a9), region = 32  ;;  %s187_s7 = scalar_lea.sflag (!%p181_p4), [#allocation3], %s186_s28 }
  0x2d   : > { %s427_s4 = smul.u32 (!%p181_p4), 12, %s186_s28 }
  0x2f   : > { %s190_s8 = scalar_lea.vmem (!%p181_p4), [#allocation2], %s427_s4 }
  0x33   : > { %545 = dma.done.wait (%p637_p7), %s187_s7, 192  }
  0x34   : > { %547 = vsyncadd (%p637_p7), %s187_s7, 4294967104  ;;  %v576_v0 = vmov 0.0   ;;  %vm577_vm0 = vmmov 0   ;;  %v488_v1 = vld [vmem:[%s190_s8] sm:$0xff]   ;;  %vm252_vm1 = vcmask 1043456   ;;  %vm248_vm2 = vcmask 195584  }
  0x35   : > { %418 = vmatprep.subr.bf16.mxu0 %v576_v0  ;;  %422 = vmatprep.mubr.msk.bf16.mxu0 %vm577_vm0, %v576_v0  ;;  %v489_v2 = vld [vmem:[%s190_s8 + $0x8] ss:$0 sps:$4 sm:$0xff]   ;;  %v235_v4 = vld [vmem:[%s729_s1] sm:$0x3]  ;;  %p219_p7 = scmp.lt.s32.totalorder %s562_s15, 1  ;;  %vm233_vm3 = vcmask 3072   ;;  %v300_v5 = vlaneseq }
  0x36   : > { %419 = vmatpush3.bf16.msra.mxu0 %v488_v1  ;;  %v254_v3 = vsel %vm252_vm1, %v489_v2, 0 }
  0x37   : > { %420 = vmatprep.subr.bf16.mxu0 %v576_v0  ;;  %s743_s15 = smov (!%p219_p7, %s562_s15), 1  ;;  %v301_v6 = vshrl.u32 %v300_v5, 7 }
  0x38   : > { %s409_s22 = sshll.u32 %s743_s15, 2  ;;  %s408_s10 = sshll.u32 %s743_s15, 1 }
  0x39   : > { %s227_s9 = scalar_lea.vmem %s731_s3, %s409_s22  ;;  %s222_s18 = scalar_lea.vmem %s730_s2, %s408_s10  ;;  %v302_v9 = vsub.s32 3, %v301_v6  ;;  %vm306_vm4 = vcmp.eq.s32.totalorder %v301_v6, 0 }
  0x3a   : > { %421 = vmatpush3.bf16.msra.mxu0 %v254_v3  ;;  %234 = vst.msk [vmem:[%s227_s9] sm:$0xf] %vm233_vm3, %v576_v0  ;;  %v296_v7 = vld [vmem:[%s222_s18] sm:$0x3] }
  0x3b   : > { %v297_v8 = vunpack.c.l.bf16 %v296_v7 }
  0x3d   : > { %423 = vmatmul.mubr.msk.bf16.vlgmr.msra.gmra.mrb[0].mxu0 %vm248_vm2, %v235_v4  ;;  %v303_v10 = vrot.slane %v297_v8, %v302_v9 }
  0x3f   : > { %v307_v15 = vsel %vm306_vm4, %v303_v10, 1.0 }
  0x41   : > { %v309_v20 = vld [vmem:[%s227_s9] sm:$0xf] }
 0x110   : > { %v290_v11 = vpop.f32.mrb[0].mxu0 }
 0x111   : > { %v298_v12 = vsub.f32 %v290_v11, %v297_v8  ;;  %v424_v13 = vpop.f32.mrb[1].mxu0 }
 0x112   : > { %v293_v14 = vpop.f32.mrb[2].mxu0 }
 0x113   : > { %v299_v16 = vmul.f32 %v298_v12, %v298_v12  ;;  %v425_v17 = vpop.f32.mrb[3].mxu0 }
 0x115   : > { %v308_v18 = vmul.f32 %v307_v15, %v299_v16 }
 0x117   : > { %v310_v19 = vsel %vm252_vm1, %v308_v18, 0.0 }
 0x118   : > { %311 = vadd.xlane.f32.xlu0 %v310_v19 }
 0x1a5   : > { %v312_v21 = vpop.xlane.xlu0 %311 }
 0x1a6   : > { %v313_v22 = vadd.f32 %v312_v21, %v309_v20 }
 0x1a8   : > { %315 = vst.msk [vmem:[%s227_s9] sm:$0xf] %vm233_vm3, %v313_v22 }
 0x1a9 PF: > { %s16_s17 = sadd.s32 1, %s570_s17   ;;  %s735_s12 = smov %s554_s13 }
 0x1aa   : > { %p13_p9 = scmp.ge.s32.totalorder %s16_s17, 4   ;;  %s736_s13 = smov %s558_s14 }
 0x1ab   : > { %s737_s14 = smov %s643_s23  ;;  %s738_s15 = smov %s566_s16 }
 0x1ac   : > { %s739_s16 = smov %s741_s19  ;;  %15 = sbr.rel (!%p13_p9) target bundleno = 4 (0x4), region = 79 }
 0x1b3   :  { %335 = vsyncpa [#allocation3], 1 }
 0x1b4   :  { %337 = vsyncpa [#allocation3 + $0x1], 1 }

</bundles_post_ra>
